<compile_context>
chip_gen: v7x
topology: tpu7x:2x2x1
jax: 0.10.0
libtpu: 0.0.40
codegen_flags: <defaults>
</compile_context>

<pallas_src>
import jax
import jax.numpy as jnp
from jax.experimental import pallas as pl
from jax.experimental.pallas import tpu as pltpu


# ----------------------------------------------------------------------------
# Fused kernel: one image per grid step.
#   x_ref : (1, C, HW)   channels on sublanes, spatial (lane-dense) on lanes
#   w1_ref: (Ch, C)      first Linear weight  (PyTorch layout: out x in)
#   b1_ref: (Ch, 1)
#   w2_ref: (C, Ch)      second Linear weight
#   b2_ref: (C, 1)
#   o_ref : (1, C, HW)
# ----------------------------------------------------------------------------
def _channel_gate_kernel(x_ref, w1_ref, b1_ref, w2_ref, b2_ref, o_ref):
    x = x_ref[0].astype(jnp.float32)                       # (C, HW)
    hw = x.shape[1]

    # Global average / max pooling over the spatial (lane) axis.
    avg = jnp.sum(x, axis=1, keepdims=True) * (1.0 / hw)   # (C, 1)
    mx = jnp.max(x, axis=1, keepdims=True)                 # (C, 1)
    pooled = jnp.concatenate([avg, mx], axis=1)            # (C, 2) cols=[avg,max]

    # Shared MLP on both pooled vectors at once (PyTorch Linear: y = W x + b).
    h = jnp.dot(w1_ref[...], pooled,
                preferred_element_type=jnp.float32)        # (Ch, 2)
    h = jnp.maximum(h + b1_ref[...], 0.0)                  # ReLU
    att = jnp.dot(w2_ref[...], h,
                  preferred_element_type=jnp.float32)      # (C, 2)
    att = att + b2_ref[...]

    # channel_att_sum = att(avg) + att(max); sigmoid; broadcast over lanes.
    scale = jax.nn.sigmoid(att[:, 0:1] + att[:, 1:2])      # (C, 1)
    o_ref[0] = (x * scale).astype(o_ref.dtype)


def channel_gate_forward(x_nchw, w1, b1, w2, b2):
    """ChannelGate forward, pool_types=['avg', 'max'].

    x_nchw: (N, C, H, W)
    w1: (Ch, C), b1: (Ch,)   -- Linear(C, C // reduction_ratio)
    w2: (C, Ch), b2: (C,)    -- Linear(C // reduction_ratio, C)
    """
    N, C, H, W = x_nchw.shape
    HW = H * W
    Ch = w1.shape[0]

    x3 = x_nchw.reshape(N, C, HW)   # lane-dense spatial axis

    out3 = pl.pallas_call(
        _channel_gate_kernel,
        out_shape=jax.ShapeDtypeStruct((N, C, HW), x_nchw.dtype),
        grid_spec=pltpu.PrefetchScalarGridSpec(
            num_scalar_prefetch=0,
            grid=(N,),
            in_specs=[
                pl.BlockSpec((1, C, HW), lambda n: (n, 0, 0)),
                pl.BlockSpec((Ch, C), lambda n: (0, 0)),
                pl.BlockSpec((Ch, 1), lambda n: (0, 0)),
                pl.BlockSpec((C, Ch), lambda n: (0, 0)),
                pl.BlockSpec((C, 1), lambda n: (0, 0)),
            ],
            out_specs=pl.BlockSpec((1, C, HW), lambda n: (n, 0, 0)),
        ),
        compiler_params=pltpu.CompilerParams(
            dimension_semantics=("parallel",)),
    )(x3, w1, b1.reshape(Ch, 1), w2, b2.reshape(C, 1))

    return out3.reshape(N, C, H, W)


channel_gate_forward = jax.jit(channel_gate_forward)


# ----------------------------------------------------------------------------
# Pure-JAX reference (matches the PyTorch module forward).
# ----------------------------------------------------------------------------
def reference_forward(x, w1, b1, w2, b2):
    N, C, H, W = x.shape
    xf = x.reshape(N, C, H * W)
    avg = jnp.mean(xf, axis=2)          # (N, C)  == F.avg_pool2d(x, (H, W))
    mx = jnp.max(xf, axis=2)            # (N, C)  == F.max_pool2d(x, (H, W))

    def mlp(p):
        h = jnp.maximum(p @ w1.T + b1, 0.0)
        return h @ w2.T + b2

    att = mlp(avg) + mlp(mx)            # (N, C)
    scale = jax.nn.sigmoid(att)[:, :, None, None]
    return x * scale


if __name__ == "__main__":
    # Small shapes consistent with the module: batch=2, gate_channels=32,
    # reduction_ratio=16 (-> hidden=2), 16x16 spatial.
    N, C, H, W = 2, 32, 16, 16
    reduction_ratio = 16
    Ch = C // reduction_ratio

    key = jax.random.PRNGKey(0)
    kx, k1, k2, k3, k4 = jax.random.split(key, 5)

    x = jax.random.normal(kx, (N, C, H, W), dtype=jnp.float32)
    # Deterministic synthetic parameters (PyTorch Linear layout: out x in).
    w1 = 0.2 * jax.random.normal(k1, (Ch, C), dtype=jnp.float32)
    b1 = 0.1 * jax.random.normal(k2, (Ch,), dtype=jnp.float32)
    w2 = 0.2 * jax.random.normal(k3, (C, Ch), dtype=jnp.float32)
    b2 = 0.1 * jax.random.normal(k4, (C,), dtype=jnp.float32)

    out = channel_gate_forward(x, w1, b1, w2, b2)
    out = jax.block_until_ready(out)

    ref = reference_forward(x, w1, b1, w2, b2)
    assert out.shape == (N, C, H, W), out.shape
    assert jnp.allclose(out, ref, atol=1e-4, rtol=1e-4), \
        float(jnp.max(jnp.abs(out - ref)))

    print("KERNEL_OK")
</pallas_src>

<mosaic_0001>
module attributes {stable_mosaic.version = 11 : i64} {
  func.func @_channel_gate_kernel(%arg0: i32, %arg1: memref<1x32x256xf32, #tpu.memory_space<vmem>>, %arg2: memref<2x32xf32, #tpu.memory_space<vmem>>, %arg3: memref<2x1xf32, #tpu.memory_space<vmem>>, %arg4: memref<32x2xf32, #tpu.memory_space<vmem>>, %arg5: memref<32x1xf32, #tpu.memory_space<vmem>>, %arg6: memref<1x32x256xf32, #tpu.memory_space<vmem>>) attributes {dimension_semantics = [#tpu.dimension_semantics<parallel>], iteration_bounds = array<i64: 2>, scalar_prefetch = 0 : i64, scratch_operands = 0 : i64, tpu.core_type = #tpu.core_type<tc>, window_params = [{transform_indices = @transform_0, window_bounds = array<i64: 1, 32, 256>}, {pipeline_mode = #tpu.pipeline_mode<synchronous>, transform_indices = @transform_1, window_bounds = array<i64: 2, 32>}, {pipeline_mode = #tpu.pipeline_mode<synchronous>, transform_indices = @transform_2, window_bounds = array<i64: 2, 1>}, {pipeline_mode = #tpu.pipeline_mode<synchronous>, transform_indices = @transform_3, window_bounds = array<i64: 32, 2>}, {pipeline_mode = #tpu.pipeline_mode<synchronous>, transform_indices = @transform_4, window_bounds = array<i64: 32, 1>}, {transform_indices = @transform_5, window_bounds = array<i64: 1, 32, 256>}]} {
    %c0 = arith.constant 0 : index
    %c0_0 = arith.constant 0 : index
    %c0_1 = arith.constant 0 : index
    %0 = vector.load %arg1[%c0, %c0_0, %c0_1] : memref<1x32x256xf32, #tpu.memory_space<vmem>>, vector<1x32x256xf32>
    %1 = vector.shape_cast %0 : vector<1x32x256xf32> to vector<32x256xf32>
    %cst = arith.constant dense<0.000000e+00> : vector<32xf32>
    %2 = vector.multi_reduction <add>, %1, %cst [1] : vector<32x256xf32> to vector<32xf32>
    %3 = vector.shape_cast %2 : vector<32xf32> to vector<32x1xf32>
    %cst_2 = arith.constant 3.906250e-03 : f32
    %4 = vector.broadcast %cst_2 : f32 to vector<32x1xf32>
    %5 = arith.mulf %3, %4 : vector<32x1xf32>
    %cst_3 = arith.constant dense<0xFF800000> : vector<32xf32>
    %6 = vector.multi_reduction <maximumf>, %1, %cst_3 [1] : vector<32x256xf32> to vector<32xf32>
    %7 = vector.shape_cast %6 : vector<32xf32> to vector<32x1xf32>
    %8 = tpu.concatenate %5, %7 in 1 : vector<32x1xf32>, vector<32x1xf32> -> vector<32x2xf32>
    %c0_4 = arith.constant 0 : index
    %c0_5 = arith.constant 0 : index
    %9 = vector.load %arg2[%c0_4, %c0_5] : memref<2x32xf32, #tpu.memory_space<vmem>>, vector<2x32xf32>
    %cst_6 = arith.constant dense<0.000000e+00> : vector<2x2xf32>
    %10 = tpu.matmul %9, %8, %cst_6 {dimension_numbers = #tpu.dot_dimension_numbers<[1], [0], [0], [1], [0, 0, 1, 1], [], []>} : vector<2x32xf32>, vector<32x2xf32>, vector<2x2xf32> -> vector<2x2xf32>
    %c0_7 = arith.constant 0 : index
    %c0_8 = arith.constant 0 : index
    %11 = vector.load %arg3[%c0_7, %c0_8] : memref<2x1xf32, #tpu.memory_space<vmem>>, vector<2x1xf32>
    %12 = vector.broadcast %11 : vector<2x1xf32> to vector<2x2xf32>
    %13 = arith.addf %10, %12 : vector<2x2xf32>
    %cst_9 = arith.constant 0.000000e+00 : f32
    %14 = vector.broadcast %cst_9 : f32 to vector<2x2xf32>
    %15 = arith.maximumf %13, %14 : vector<2x2xf32>
    %c0_10 = arith.constant 0 : index
    %c0_11 = arith.constant 0 : index
    %16 = vector.load %arg4[%c0_10, %c0_11] : memref<32x2xf32, #tpu.memory_space<vmem>>, vector<32x2xf32>
    %cst_12 = arith.constant dense<0.000000e+00> : vector<32x2xf32>
    %17 = tpu.matmul %16, %15, %cst_12 {dimension_numbers = #tpu.dot_dimension_numbers<[1], [0], [0], [1], [0, 0, 1, 1], [], []>} : vector<32x2xf32>, vector<2x2xf32>, vector<32x2xf32> -> vector<32x2xf32>
    %c0_13 = arith.constant 0 : index
    %c0_14 = arith.constant 0 : index
    %18 = vector.load %arg5[%c0_13, %c0_14] : memref<32x1xf32, #tpu.memory_space<vmem>>, vector<32x1xf32>
    %19 = vector.broadcast %18 : vector<32x1xf32> to vector<32x2xf32>
    %20 = arith.addf %17, %19 : vector<32x2xf32>
    %21 = vector.extract_strided_slice %20 {offsets = [0, 0], sizes = [32, 1], strides = [1, 1]} : vector<32x2xf32> to vector<32x1xf32>
    %22 = vector.extract_strided_slice %20 {offsets = [0, 1], sizes = [32, 1], strides = [1, 1]} : vector<32x2xf32> to vector<32x1xf32>
    %23 = arith.addf %21, %22 : vector<32x1xf32>
    %24 = arith.negf %23 : vector<32x1xf32>
    %25 = math.exp %24 : vector<32x1xf32>
    %cst_15 = arith.constant 1.000000e+00 : f32
    %26 = vector.broadcast %cst_15 : f32 to vector<32x1xf32>
    %27 = arith.addf %26, %25 : vector<32x1xf32>
    %28 = arith.divf %26, %27 : vector<32x1xf32>
    %29 = vector.broadcast %28 : vector<32x1xf32> to vector<32x256xf32>
    %30 = arith.mulf %1, %29 : vector<32x256xf32>
    %c0_16 = arith.constant 0 : index
    %c0_17 = arith.constant 0 : index
    %c0_18 = arith.constant 0 : index
    %31 = vector.load %arg6[%c0_16, %c0_17, %c0_18] : memref<1x32x256xf32, #tpu.memory_space<vmem>>, vector<1x32x256xf32>
    %32 = vector.shape_cast %31 : vector<1x32x256xf32> to vector<32x256xf32>
    %33 = vector.shape_cast %30 : vector<32x256xf32> to vector<1x32x256xf32>
    tpu.vector_store %arg6[%c0_16, %c0_17, %c0_18], %33 {strides = array<i32>} : memref<1x32x256xf32, #tpu.memory_space<vmem>>, vector<1x32x256xf32>,
    return
  }
  func.func @transform_0(%arg0: i32) -> (i32, i32, i32) {
    %c0_i32 = arith.constant 0 : i32
    %c0_i32_0 = arith.constant 0 : i32
    %c0_i32_1 = arith.constant 0 : i32
    return %arg0, %c0_i32, %c0_i32_0 : i32, i32, i32
  }
  func.func @transform_1(%arg0: i32) -> (i32, i32) {
    %c0_i32 = arith.constant 0 : i32
    %c0_i32_0 = arith.constant 0 : i32
    %c0_i32_1 = arith.constant 0 : i32
    return %c0_i32, %c0_i32_0 : i32, i32
  }
  func.func @transform_2(%arg0: i32) -> (i32, i32) {
    %c0_i32 = arith.constant 0 : i32
    %c0_i32_0 = arith.constant 0 : i32
    %c0_i32_1 = arith.constant 0 : i32
    return %c0_i32, %c0_i32_0 : i32, i32
  }
  func.func @transform_3(%arg0: i32) -> (i32, i32) {
    %c0_i32 = arith.constant 0 : i32
    %c0_i32_0 = arith.constant 0 : i32
    %c0_i32_1 = arith.constant 0 : i32
    return %c0_i32, %c0_i32_0 : i32, i32
  }
  func.func @transform_4(%arg0: i32) -> (i32, i32) {
    %c0_i32 = arith.constant 0 : i32
    %c0_i32_0 = arith.constant 0 : i32
    %c0_i32_1 = arith.constant 0 : i32
    return %c0_i32, %c0_i32_0 : i32, i32
  }
  func.func @transform_5(%arg0: i32) -> (i32, i32, i32) {
    %c0_i32 = arith.constant 0 : i32
    %c0_i32_0 = arith.constant 0 : i32
    %c0_i32_1 = arith.constant 0 : i32
    return %arg0, %c0_i32, %c0_i32_0 : i32, i32, i32
  }
}

</mosaic_0001>

<bundles_post_ra>
// kernel: channel_gate_forward.1
= control target key start
LH: loop header
LB: loop body
LE: loop exit
PB: predicated region body
PF: predicated region fallthrough
CT: control target
= control target key end

     0   :  { %s745_s18 = smov 0   ;;  %s843_s0 = inlined_call_operand.vmem [shape: f32[2,32,256], index: 0, kind: input, shape index: {}]   ;;  %s844_s1 = inlined_call_operand.vmem [shape: f32[2,32], index: 1, kind: input, shape index: {}]   ;;  %s845_s2 = inlined_call_operand.vmem [shape: f32[2,1], index: 2, kind: input, shape index: {}]   ;;  %s846_s3 = inlined_call_operand.vmem [shape: f32[32,2], index: 3, kind: input, shape index: {}]   ;;  %s847_s4 = inlined_call_operand.vmem [shape: f32[32,1], index: 4, kind: input, shape index: {}]   ;;  %s848_s5 = inlined_call_operand.vmem [shape: f32[2,32,256], index: 5, kind: output, shape index: {}]  }
   0x1 LB: > { %s613_s19 = sadd.s32 4294967295, %s708_s18   ;;  %p617_p0 = scmp.ge.s32.totalorder %s708_s18, 1  ;;  %s708_s18 = sphi %s745_s18, %s15_s18  }
   0x2   : > { %p187_p1 = scmp.lt.s32.totalorder %s708_s18, 3 }
   0x4   : > { %p188_p2 = pnand %p617_p0, %p187_p1 }
   0x5   : > { %p215_p3 = scmp.lt.s32.totalorder (!%p188_p2), %s613_s19, 1  ;;  %v710_v16 = vmov (!%p188_p2), 0.0|0.0   ;;  %vm711_vm0 = vmmov (!%p188_p2), 0   ;;  %v712_v17 = vmov (!%p188_p2), 0.0   ;;  %v267_v18 = vld [vmem:[%s845_s2] sm:$0x3] (!%p188_p2) }
   0x6   : > { %191 = sbr.rel (%p188_p2) target bundleno = 897 (0x381), region = 40  ;;  %665 = vmatprep.subr.bf16.mxu0 (!%p188_p2), %v710_v16  ;;  %654 = vmatprep.mubr.msk.f32.mxu0 (!%p188_p2), %vm711_vm0, %v712_v17  ;;  %v713_v19 = vmov (!%p188_p2), 0   ;;  %vm261_vm1 = vcmask (!%p188_p2), 7168   ;;  %v266_v38 = vld [vmem:[%s844_s1] sm:$0x3] (!%p188_p2)  ;;  %vm273_vm2 = vcmask (!%p188_p2), 261120  }
   0x7   : > { %684 = vset.pattern.permute.xlu0 (!%p188_p2), %v713_v19  ;;  %685 = vset.pattern.permute.xlu1 (!%p188_p2), %v713_v19  ;;  %v348_v39 = vld [vmem:[%s846_s3] sm:$0xff] (!%p188_p2)  ;;  %vm376_vm3 = vcmask (!%p188_p2), 15360   ;;  %v353_v41 = vld [vmem:[%s847_s4 + $0x8] sm:$0xff] (!%p188_p2)  ;;  %v354_v42 = vld [vmem:[%s847_s4 + $0x10] sm:$0xff] (!%p188_p2)  ;;  %vm389_vm4 = vcmask (!%p188_p2), 1041408   ;;  %s714_s22 = smov (!%p188_p2), 127  }
   0x8   : > { %659 = vmatprep.mubr.msk.f32.mxu1 (!%p188_p2), %vm376_vm3, %v348_v39  ;;  %v352_v40 = vld [vmem:[%s847_s4] sm:$0xff] (!%p188_p2)  ;;  %v355_v43 = vld [vmem:[%s847_s4 + $0x18] sm:$0xff] (!%p188_p2)  ;;  %v349_v49 = vld [vmem:[%s846_s3 + $0x8] sm:$0xff] (!%p188_p2) }
   0x9   : > { %v350_v50 = vld [vmem:[%s846_s3 + $0x10] sm:$0xff] (!%p188_p2)  ;;  %v351_v51 = vld [vmem:[%s846_s3 + $0x18] sm:$0xff] (!%p188_p2) }
   0xd   : > { %s850_s19 = smov (!%p215_p3, %s613_s19), 1 }
   0xe   : > { %s634_s20 = sshll.u32 %s850_s19, 6 }
   0xf   : > { %s219_s23 = scalar_lea.vmem %s843_s0, %s634_s20  ;;  %s224_s25 = scalar_lea.vmem %s848_s5, %s634_s20 }
  0x10   : > { %v761_v0 = vld [vmem:[%s219_s23] sm:$0xff]  ;;  %v763_v1 = vld [vmem:[%s219_s23 + $0x8] sm:$0xff]  ;;  %v765_v2 = vld [vmem:[%s219_s23 + $0x10] sm:$0xff] }
  0x11   : > { %v249_v3 = vmax.f32 %v761_v0, %v763_v1  ;;  %v233_v4 = vadd.f32 %v763_v1, %v761_v0  ;;  %v771_v5 = vld [vmem:[%s219_s23 + $0x18] sm:$0xff]  ;;  %v777_v8 = vld [vmem:[%s219_s23 + $0x30] sm:$0xff]  ;;  %v781_v10 = vld [vmem:[%s219_s23 + $0x20] sm:$0xff] }
  0x12   : > { %v252_v6 = vmax.f32 %v765_v2, %v771_v5  ;;  %v236_v7 = vadd.f32 %v771_v5, %v765_v2  ;;  %v779_v9 = vld [vmem:[%s219_s23 + $0x38] sm:$0xff]  ;;  %v783_v11 = vld [vmem:[%s219_s23 + $0x28] sm:$0xff] }
  0x13   : > { %250 = vmax.xlane.f32.xlu1 %v249_v3  ;;  %234 = vadd.xlane.f32.xlu0 %v233_v4  ;;  %v242_v12 = vadd.f32 %v779_v9, %v777_v8  ;;  %v239_v13 = vadd.f32 %v783_v11, %v781_v10  ;;  %v258_v14 = vmax.f32 %v777_v8, %v779_v9 }
  0x14   : > { %v255_v15 = vmax.f32 %v781_v10, %v783_v11 }
  0x17   : > { %253 = vmax.xlane.f32.xlu1 %v252_v6  ;;  %237 = vadd.xlane.f32.xlu0 %v236_v7 }
  0x1b   : > { %243 = vadd.xlane.f32.xlu1 %v242_v12  ;;  %240 = vadd.xlane.f32.xlu0 %v239_v13 }
  0x1f   : > { %259 = vmax.xlane.f32.xlu1 %v258_v14  ;;  %256 = vmax.xlane.f32.xlu0 %v255_v15 }
  0x30   : > { %358 = vperm.xlu1 %685, %v352_v40  }
  0x34   : > { %363 = vperm.xlu1 %685, %v353_v41  }
  0x35   : > { %270 = vperm.xlu0 %684, %v267_v18  }
  0x38   : > { %368 = vperm.xlu1 %685, %v354_v42  }
  0x3c   : > { %373 = vperm.xlu1 %685, %v355_v43  }
  0xa0   : > { %v251_v20 = vpop.xlane.xlu1 %250  ;;  %v235_v21 = vpop.xlane.xlu0 %234 }
  0xa1   : > { %v245_v22 = vmul.f32 0.00390625, %v235_v21 }
  0xa3   : > { %v262_v26 = vsel %vm261_vm1, %v245_v22, %v251_v20 }
  0xa4   : > { %v254_v23 = vpop.xlane.xlu1 %253  ;;  %v238_v24 = vpop.xlane.xlu0 %237 }
  0xa5   : > { %v246_v25 = vmul.f32 0.00390625, %v238_v24 }
  0xa7   : > { %v263_v27 = vsel %vm261_vm1, %v246_v25, %v254_v23 }
  0xa8   : > { %v244_v28 = vpop.xlane.xlu1 %243  ;;  %v241_v29 = vpop.xlane.xlu0 %240  ;;  %v666_v30 = vpack.c.bf16 %v263_v27, %v262_v26 }
  0xa9   : > { %v248_v31 = vmul.f32 0.00390625, %v244_v28  ;;  %v247_v32 = vmul.f32 0.00390625, %v241_v29 }
  0xaa   : > { %667 = vmatpush3.bf16.msra.mxu0 %v666_v30 }
  0xab   : > { %668 = vmatprep.subr.bf16.mxu0 %v710_v16 }
  0xac   : > { %v260_v33 = vpop.xlane.xlu1 %259  ;;  %v257_v34 = vpop.xlane.xlu0 %256 }
  0xad   : > { %v265_v35 = vsel %vm261_vm1, %v248_v31, %v260_v33  ;;  %v264_v36 = vsel %vm261_vm1, %v247_v32, %v257_v34 }
  0xae   : > { %v669_v37 = vpack.c.bf16 %v265_v35, %v264_v36 }
  0xb0   : > { %670 = vmatpush3.bf16.msra.mxu0 %v669_v37  ;;  %v359_v52 = vpop.permute.xlu1 %358 }
  0xb3   : > { %655 = vmatmul.mubr.msk.f32.vlgmr.msra.gmra.mrb[0].mxu0 %vm273_vm2, %v266_v38 }
  0xb4   : > { %v271_v44 = vpop.permute.xlu0 %270  ;;  %v364_v53 = vpop.permute.xlu1 %363 }
  0xb8   : > { %v369_v60 = vpop.permute.xlu1 %368 }
  0xbc   : > { %v374_v62 = vpop.permute.xlu1 %373 }
 0x186   : > { %v343_v45 = vpop.f32.mrb[0].mxu0 }
 0x187   : > { %v344_v46 = vadd.f32 %v343_v45, %v271_v44  ;;  %v656_v47 = vpop.f32.mrb[1].mxu0 }
 0x189   : > { %v347_v48 = vmax.f32 %v344_v46, 0.0 }
 0x18b   : > { %657 = vmatprep.subr.msk.mxu1 %vm389_vm4, %v347_v48 }
 0x18c   : > { %658 = vmatpush3.msk.msra.mxu1 %vm389_vm4, %v347_v48 }
 0x18d   : > { %660 = vmatmul.mubr.msk.f32.vlgmr.msra.gmra.mrb[0].mxu1 %vm376_vm3, %v349_v49 }
 0x18e   : > { %662 = vmatprep.mubr.msk.f32.mxu1 %vm376_vm3, %v350_v50 }
 0x191   : > { %663 = vmatmul.mubr.msk.f32.gmra.mrb[2].mxu1 %vm376_vm3, %v351_v51 }
 0x260   : > { %v661_v54 = vpop.f32.mrb[0].mxu1 }
 0x261   : > { %v465_v55 = vadd.f32 %v661_v54, %v364_v53  ;;  %v459_v56 = vpop.f32.mrb[1].mxu1 }
 0x262   : > { %v460_v58 = vadd.f32 %v459_v56, %v359_v52 }
 0x263   : > { %484 = vrot.lane.b32.xlu1 %v465_v55, %s714_s22 }
 0x264   : > { %v664_v57 = vpop.f32.mrb[2].mxu1 }
 0x265   : > { %v469_v59 = vpop.f32.mrb[3].mxu1  ;;  %v475_v63 = vadd.f32 %v664_v57, %v374_v62 }
 0x266   : > { %v470_v61 = vadd.f32 %v469_v59, %v369_v60 }
 0x267   : > { %482 = vrot.lane.b32.xlu1 %v460_v58, %s714_s22 }
 0x26b   : > { %486 = vrot.lane.b32.xlu1 %v470_v61, %s714_s22 }
 0x26f   : > { %488 = vrot.lane.b32.xlu1 %v475_v63, %s714_s22 }
 0x2d5   : > { %v485_v3 = vpop.permute.xlu1 %484 }
 0x2d6   : > { %v495_v4 = vadd.f32 %v485_v3, %v465_v55 }
 0x2d8   : > { %v629_v6 = vmul.f32 -1.442695, %v495_v4 }
 0x2d9   : > { %v483_v7 = vpop.permute.xlu1 %482 }
 0x2da   : > { %686 = vpow2.f32 %v629_v6  ;;  %v494_v12 = vadd.f32 %v483_v7, %v460_v58 }
 0x2dc   : > { %v628_v13 = vmul.f32 -1.442695, %v494_v12 }
 0x2dd   : > { %v487_v14 = vpop.permute.xlu1 %486 }
 0x2de   : > { %688 = vpow2.f32 %v628_v13  ;;  %v496_v15 = vadd.f32 %v487_v14, %v470_v61 }
 0x2e0   : > { %v630_v16 = vmul.f32 -1.442695, %v496_v15 }
 0x2e1   : > { %v489_v17 = vpop.permute.xlu1 %488 }
 0x2e2   : > { %690 = vpow2.f32 %v630_v16  ;;  %v497_v18 = vadd.f32 %v489_v17, %v475_v63 }
 0x2e4   : > { %v687_v19 = vpop.eup %686  ;;  %v631_v20 = vmul.f32 -1.442695, %v497_v18 }
 0x2e5   : > { %v511_v21 = vadd.f32 1.0, %v687_v19 }
 0x2e6   : > { %692 = vpow2.f32 %v631_v20 }
 0x2e7   : > { %694 = vrcp.f32 %v511_v21 }
 0x2e8   : > { %v689_v22 = vpop.eup %688 }
 0x2e9   : > { %v510_v23 = vadd.f32 1.0, %v689_v22 }
 0x2eb   : > { %696 = vrcp.f32 %v510_v23 }
 0x2ec   : > { %v691_v24 = vpop.eup %690 }
 0x2ed   : > { %v512_v25 = vadd.f32 1.0, %v691_v24 }
 0x2ef   : > { %698 = vrcp.f32 %v512_v25 }
 0x2f0   : > { %v693_v26 = vpop.eup %692 }
 0x2f1   : > { %v695_v27 = vpop.eup %694  ;;  %v513_v28 = vadd.f32 1.0, %v693_v26 }
 0x2f2   : > { %529 = vperm.xlu1 %685, %v695_v27  }
 0x2f3   : > { %700 = vrcp.f32 %v513_v28 }
 0x2f5   : > { %v697_v29 = vpop.eup %696 }
 0x2f6   : > { %524 = vperm.xlu0 %684, %v697_v29  }
 0x2f9   : > { %v699_v30 = vpop.eup %698 }
 0x2fa   : > { %534 = vperm.xlu0 %684, %v699_v30  }
 0x2fd   : > { %v701_v31 = vpop.eup %700 }
 0x2fe   : > { %539 = vperm.xlu1 %685, %v701_v31  }
 0x371   : > { %v530_v32 = vpop.permute.xlu1 %529 }
 0x372   : > { %v544_v33 = vmul.f32 %v530_v32, %v765_v2  ;;  %v545_v34 = vmul.f32 %v530_v32, %v771_v5 }
 0x374   : > { %552 = vst [vmem:[%s224_s25 + $0x10] sm:$0xff] %v544_v33  ;;  %553 = vst [vmem:[%s224_s25 + $0x18] sm:$0xff] %v545_v34 }
 0x375   : > { %v525_v35 = vpop.permute.xlu0 %524 }
 0x376   : > { %v542_v36 = vmul.f32 %v525_v35, %v761_v0  ;;  %v543_v37 = vmul.f32 %v525_v35, %v763_v1 }
 0x378   : > { %550 = vst [vmem:[%s224_s25] sm:$0xff] %v542_v36  ;;  %551 = vst [vmem:[%s224_s25 + $0x8] sm:$0xff] %v543_v37 }
 0x379   : > { %v535_v38 = vpop.permute.xlu0 %534 }
 0x37a   : > { %v546_v39 = vmul.f32 %v535_v38, %v781_v10  ;;  %v547_v40 = vmul.f32 %v535_v38, %v783_v11 }
 0x37c   : > { %554 = vst [vmem:[%s224_s25 + $0x20] sm:$0xff] %v546_v39  ;;  %555 = vst [vmem:[%s224_s25 + $0x28] sm:$0xff] %v547_v40 }
 0x37d   : > { %v540_v41 = vpop.permute.xlu1 %539 }
 0x37e   : > { %v548_v2 = vmul.f32 %v540_v41, %v777_v8  ;;  %v549_v5 = vmul.f32 %v540_v41, %v779_v9 }
 0x380   : > { %556 = vst [vmem:[%s224_s25 + $0x30] sm:$0xff] %v548_v2  ;;  %557 = vst [vmem:[%s224_s25 + $0x38] sm:$0xff] %v549_v5 }
 0x381 PF: > { %s15_s18 = sadd.s32 1, %s708_s18  }
 0x382   : > { %p12_p4 = scmp.ge.s32.totalorder %s15_s18, 4  }
 0x384   :  { %14 = sbr.rel (!%p12_p4) target bundleno = 1 (0x1), region = 70 }

</bundles_post_ra>
